<compile_context>
chip_gen: v5e
topology: v5e:2x2
jax: 0.10.0
libtpu: 0.0.40
codegen_flags: <defaults>
</compile_context>

<pallas_src>
import jax
import jax.numpy as jnp
from jax.experimental import pallas as pl
from jax.experimental.pallas import tpu as pltpu


def _affine_kernel(s_ref, x_ref, o_ref):
    # s_ref: (2,) f32 SMEM ref holding the folded scalars [a, c].
    # x_ref/o_ref: lane-dense (block_rows, lanes) VMEM tiles in the I/O dtype.
    a = s_ref[0]
    c = s_ref[1]
    xv = x_ref[...].astype(jnp.float32)          # upcast in-register only
    o_ref[...] = (xv * a + c).astype(o_ref.dtype)  # store back in native dtype


def _round_up(v, m):
    return ((v + m - 1) // m) * m


def linear_regression_forward(x, w1, b1, w2, b2, *,
                              lanes=1024,
                              max_block_rows=None,
                              target_tile_bytes=4 << 20,
                              small_n_threshold=1 << 16):
    """x: (N, 1); w1: (5, 1); b1: (5,); w2: (1, 5); b2: (1,) — PyTorch layouts."""
    n = int(x.size)
    orig_dtype = x.dtype

    # --- Fold linear2(linear1(x)) into a*x + c (tiny, stays in plain JAX) ---
    w1f, b1f = w1.astype(jnp.float32), b1.astype(jnp.float32)
    w2f, b2f = w2.astype(jnp.float32), b2.astype(jnp.float32)
    a = (w2f @ w1f).reshape(())           # scalar: w2 . w1
    c = (w2f @ b1f + b2f).reshape(())     # scalar: w2 . b1 + b2

    # --- Small-N fast path: pad + kernel-launch overhead would dominate ---
    if n < small_n_threshold:
        return (x.astype(jnp.float32) * a + c).astype(orig_dtype)

    scalars = jnp.stack([a, c]).astype(jnp.float32)   # (2,) -> SMEM

    # --- Lane-dense slab in the *native* dtype ---------------------------------
    lanes = max(128, (int(lanes) // 128) * 128)        # lane dim: multiple of 128
    rows = pl.cdiv(n, lanes)
    rows_padded = _round_up(rows, 8)                   # sublane dim: multiple of 8
    padded_total = rows_padded * lanes

    itemsize = jnp.dtype(orig_dtype).itemsize
    # ~target_tile_bytes per buffer; with default double-buffering of input and
    # output that is ~4x this in VMEM.
    cap = max(8, (int(target_tile_bytes) // (lanes * itemsize)) // 8 * 8)
    if max_block_rows is not None:
        cap = min(cap, max(8, (int(max_block_rows) // 8) * 8))   # enforce %8 == 0
    block_rows = min(cap, rows_padded)
    if rows_padded >= 16:
        # Ensure >= 2 grid blocks so the "parallel" axis shards across v7x's
        # two TensorCores (free on single-core v5e/v6e).
        block_rows = min(block_rows, _round_up(rows_padded // 2, 8))
    num_blocks = pl.cdiv(rows_padded, block_rows)

    flat = x.reshape(-1)
    if padded_total != n:
        flat = jnp.pad(flat, (0, padded_total - n))    # small pad, < 8*lanes elems
    slab = flat.reshape(rows_padded, lanes)            # metadata-only when no pad

    out_slab = pl.pallas_call(
        _affine_kernel,
        out_shape=jax.ShapeDtypeStruct((rows_padded, lanes), orig_dtype),
        grid=(num_blocks,),
        in_specs=[
            pl.BlockSpec(memory_space=pltpu.MemorySpace.SMEM),    # folded scalars
            pl.BlockSpec((block_rows, lanes), lambda i: (i, 0)),  # streamed rows
        ],
        out_specs=pl.BlockSpec((block_rows, lanes), lambda i: (i, 0)),
        compiler_params=pltpu.CompilerParams(
            dimension_semantics=("parallel",),
            vmem_limit_bytes=32 << 20,
        ),
    )(scalars, slab)

    out = out_slab.reshape(-1)
    if padded_total != n:
        out = out[:n]
    return out.reshape(x.shape)


if __name__ == "__main__":
    key = jax.random.PRNGKey(0)
    kx, k1, k2, k3, k4 = jax.random.split(key, 5)

    # Deterministic synthetic parameters matching nn.Linear(1,5) / nn.Linear(5,1).
    w1 = jax.random.uniform(k1, (5, 1), jnp.float32, -1.0, 1.0)      # linear1.weight
    b1 = jax.random.uniform(k2, (5,), jnp.float32, -1.0, 1.0)        # linear1.bias
    w2 = jax.random.uniform(k3, (1, 5), jnp.float32, -0.447, 0.447)  # linear2.weight
    b2 = jax.random.uniform(k4, (1,), jnp.float32, -0.447, 0.447)    # linear2.bias

    def ref_fwd(xx):
        xx = xx.astype(jnp.float32)
        return (xx @ w1.T + b1) @ w2.T + b2

    # 1) Small batch, shape (N, 1) like the PyTorch module -> plain-JAX fast path.
    x = jax.random.normal(kx, (8, 1), jnp.float32)
    out = jax.block_until_ready(linear_regression_forward(x, w1, b1, w2, b2))
    assert out.shape == (8, 1), out.shape
    assert jnp.allclose(out, ref_fwd(x), atol=1e-5, rtol=1e-5)

    # 2) Same small batch forced through the Pallas kernel (single block, padded).
    out_k = jax.block_until_ready(
        linear_regression_forward(x, w1, b1, w2, b2, small_n_threshold=0))
    assert out_k.shape == (8, 1), out_k.shape
    assert jnp.allclose(out_k, ref_fwd(x), atol=1e-5, rtol=1e-5)

    # 3) Multi-block pipelined path (grid > 1, ragged tail) with tiny tiles.
    x2 = jax.random.normal(kx, (3000, 1), jnp.float32)
    out2 = jax.block_until_ready(
        linear_regression_forward(x2, w1, b1, w2, b2, small_n_threshold=0,
                                  lanes=128, max_block_rows=8))
    assert out2.shape == (3000, 1), out2.shape
    assert jnp.allclose(out2, ref_fwd(x2), atol=1e-5, rtol=1e-5)

    # 4) Native-dtype (bf16) streaming path, pad-free since N % (8*lanes) == 0.
    x3 = jax.random.normal(kx, (8192, 1), jnp.float32).astype(jnp.bfloat16)
    out3 = jax.block_until_ready(
        linear_regression_forward(x3, w1, b1, w2, b2, small_n_threshold=0))
    assert out3.shape == (8192, 1), out3.shape
    assert out3.dtype == jnp.bfloat16
    assert jnp.allclose(out3.astype(jnp.float32), ref_fwd(x3), atol=3e-2, rtol=3e-2)

    print("KERNEL_OK")
</pallas_src>

<mosaic_0001>
module attributes {stable_mosaic.version = 11 : i64} {
  func.func @_affine_kernel(%arg0: i32, %arg1: memref<2xf32, #tpu.memory_space<smem>>, %arg2: memref<8x1024xf32, #tpu.memory_space<vmem>>, %arg3: memref<8x1024xf32, #tpu.memory_space<vmem>>) attributes {dimension_semantics = [#tpu.dimension_semantics<parallel>], iteration_bounds = array<i64: 1>, scalar_prefetch = 0 : i64, scratch_operands = 0 : i64, tpu.core_type = #tpu.core_type<tc>, window_params = [{transform_indices = @transform_0, window_bounds = array<i64: 2>}, {transform_indices = @transform_1, window_bounds = array<i64: 8, 1024>}, {transform_indices = @transform_2, window_bounds = array<i64: 8, 1024>}]} {
    %c0 = arith.constant 0 : index
    %0 = memref.load %arg1[%c0] : memref<2xf32, #tpu.memory_space<smem>>
    %c1 = arith.constant 1 : index
    %1 = memref.load %arg1[%c1] : memref<2xf32, #tpu.memory_space<smem>>
    %c0_0 = arith.constant 0 : index
    %c0_1 = arith.constant 0 : index
    %2 = vector.load %arg2[%c0_0, %c0_1] : memref<8x1024xf32, #tpu.memory_space<vmem>>, vector<8x1024xf32>
    %3 = vector.broadcast %0 : f32 to vector<8x1024xf32>
    %4 = arith.mulf %2, %3 : vector<8x1024xf32>
    %5 = vector.broadcast %1 : f32 to vector<8x1024xf32>
    %6 = arith.addf %4, %5 : vector<8x1024xf32>
    %c0_2 = arith.constant 0 : index
    %c0_3 = arith.constant 0 : index
    %7 = vector.load %arg3[%c0_2, %c0_3] : memref<8x1024xf32, #tpu.memory_space<vmem>>, vector<8x1024xf32>
    tpu.vector_store %arg3[%c0_2, %c0_3], %6 {strides = array<i32>} : memref<8x1024xf32, #tpu.memory_space<vmem>>, vector<8x1024xf32>,
    return
  }
  func.func @transform_0(%arg0: i32) -> i32 {
    %c0_i32 = arith.constant 0 : i32
    %c0_i32_0 = arith.constant 0 : i32
    return %c0_i32 : i32
  }
  func.func @transform_1(%arg0: i32) -> (i32, i32) {
    %c0_i32 = arith.constant 0 : i32
    %c0_i32_0 = arith.constant 0 : i32
    return %arg0, %c0_i32 : i32, i32
  }
  func.func @transform_2(%arg0: i32) -> (i32, i32) {
    %c0_i32 = arith.constant 0 : i32
    %c0_i32_0 = arith.constant 0 : i32
    return %arg0, %c0_i32 : i32, i32
  }
}

</mosaic_0001>

<bundles_post_ra>
// kernel: tpu_custom_call.1
= control target key start
LH: loop header
LB: loop body
LE: loop exit
PB: predicated region body
PF: predicated region fallthrough
CT: control target
= control target key end

     0   :  { %7 = vsyncpa [#allocation5], 0  ;;  %s190_s0 = inlined_call_operand.hbm [shape: f32[2], index: 0, kind: input, shape index: {}]   ;;  %s191_s1 = inlined_call_operand.hbm [shape: f32[8,1024], index: 1, kind: input, shape index: {}]   ;;  %s192_s2 = inlined_call_operand.hbm [shape: f32[8,1024], index: 2, kind: output, shape index: {}]  }
   0x1   :  { %8 = vsyncpa [#allocation3], 0 }
   0x2   :  { %9 = vsyncpa [#allocation4], 0  ;;  %s15_s11 = sshll.u32 %s190_s0, 4  ;;  %s24_s14 = sshll.u32 %s191_s1, 4  ;;  %s16_s11 = int_to_ptr.hbm [resolvable:$true] %s15_s11  ;;  %s25_s14 = int_to_ptr.hbm [resolvable:$true] %s24_s14 }
   0x3   :  { %s163_s15 = smov [#allocation2]   ;;  %s164_s16 = smov [#allocation6]  }
   0x4   :  { %18 = dma.hbm_to_smem %s16_s11, 16, %s163_s15, [#allocation5]  }
   0x5   :  { %s26_s17 = sshll.u32 %s164_s16, 4  ;;  %s27_s17 = int_to_ptr.vmem [resolvable:$true] %s26_s17 }
   0x6   :  { %29 = dma.hbm_to_vmem [thread:$0]  %s25_s14, 1024, %s27_s17, [#allocation3]  }
   0x7   :  { %157 = dma.done.wait [#allocation5], 16  }
   0x8   :  { %158 = vsyncadd [#allocation5], 4294967280 }
   0x9   :  { %159 = dma.done.wait [#allocation3], 1024  }
   0xa   :  { %160 = vsyncadd [#allocation3], 4294966272 }
   0xb   :  { %38 = sfence }
   0xc   :  { %s39_s18 = sld [smem:[#allocation2]]  ;;  %v41_v0 = vld [vmem:[#allocation6] sm:$0xff]  ;;  %v42_v1 = vld [vmem:[#allocation6 + $0x8] sm:$0xff]  ;;  %v43_v2 = vld [vmem:[#allocation6 + $0x10] sm:$0xff]  ;;  %s165_s0 = smov [#allocation7]  }
   0xd   :  { %s93_s19 = sld [smem:[#allocation2 + $0x1]]  ;;  %v44_v3 = vld [vmem:[#allocation6 + $0x18] sm:$0xff]  ;;  %v45_v4 = vld [vmem:[#allocation6 + $0x20] sm:$0xff]  ;;  %v46_v5 = vld [vmem:[#allocation6 + $0x28] sm:$0xff]  ;;  %s80_s1 = sshll.u32 %s165_s0, 4  ;;  %s81_s1 = int_to_ptr.vmem [resolvable:$true] %s80_s1 }
   0xe   :  { %v47_v7 = vld [vmem:[#allocation6 + $0x30] sm:$0xff]  ;;  %v48_v12 = vld [vmem:[#allocation6 + $0x38] sm:$0xff]  ;;  %s82_s22 = sshll.u32 %s192_s2, 4  ;;  %s83_s22 = int_to_ptr.hbm [resolvable:$true] %s82_s22 }
  0x12   :  { %v49_v6 = vstv %s39_s18 }
  0x13   :  { %v50_v8 = vmul.f32 %v49_v6, %v41_v0  ;;  %v58_v9 = vstv %s93_s19  ;;  %v51_v10 = vmul.f32 %v49_v6, %v42_v1  ;;  %v52_v11 = vmul.f32 %v49_v6, %v43_v2 }
  0x14   :  { %v53_v13 = vmul.f32 %v49_v6, %v44_v3  ;;  %v54_v14 = vmul.f32 %v49_v6, %v45_v4  ;;  %v55_v15 = vmul.f32 %v49_v6, %v46_v5  ;;  %v56_v19 = vmul.f32 %v49_v6, %v47_v7 }
  0x15   :  { %v59_v16 = vadd.f32 %v58_v9, %v50_v8  ;;  %v60_v17 = vadd.f32 %v58_v9, %v51_v10  ;;  %v61_v18 = vadd.f32 %v58_v9, %v52_v11  ;;  %v57_v21 = vmul.f32 %v49_v6, %v48_v12 }
  0x16   :  { %v62_v20 = vadd.f32 %v58_v9, %v53_v13  ;;  %v63_v22 = vadd.f32 %v58_v9, %v54_v14  ;;  %v64_v23 = vadd.f32 %v58_v9, %v55_v15  ;;  %v65_v24 = vadd.f32 %v58_v9, %v56_v19 }
  0x17   :  { %67 = vst [vmem:[#allocation7] sm:$0xff] %v59_v16  ;;  %v66_v25 = vadd.f32 %v58_v9, %v57_v21 }
  0x18   :  { %68 = vst [vmem:[#allocation7 + $0x8] sm:$0xff] %v60_v17 }
  0x19   :  { %69 = vst [vmem:[#allocation7 + $0x10] sm:$0xff] %v61_v18 }
  0x1a   :  { %70 = vst [vmem:[#allocation7 + $0x18] sm:$0xff] %v62_v20 }
  0x1b   :  { %71 = vst [vmem:[#allocation7 + $0x20] sm:$0xff] %v63_v22 }
  0x1c   :  { %72 = vst [vmem:[#allocation7 + $0x28] sm:$0xff] %v64_v23 }
  0x1d   :  { %73 = vst [vmem:[#allocation7 + $0x30] sm:$0xff] %v65_v24 }
  0x1e   :  { %74 = vst [vmem:[#allocation7 + $0x38] sm:$0xff] %v66_v25 }
  0x1f   :  { %85 = dma.vmem_to_hbm [thread:$0]  %s81_s1, 1024, %s83_s22, [#allocation4]  }
  0x20   :  { %161 = dma.done.wait [#allocation4], 1024  }
  0x21   :  { %162 = vsyncadd [#allocation4], 4294966272 }
  0x22   :  { %90 = vsyncpa [#allocation3], 1 }
  0x23   :  { %91 = vsyncpa [#allocation4], 1 }
  0x24   :  { %92 = vsyncpa [#allocation5], 1 }

</bundles_post_ra>
